<compile_context>
chip_gen: v7x
topology: tpu7x:2x2x1
jax: 0.10.0
libtpu: 0.0.40
codegen_flags: <defaults>
</compile_context>

<pallas_src>
import functools
import math

import numpy as np
import jax
import jax.numpy as jnp
from jax import lax
from jax.experimental import pallas as pl
from jax.experimental.pallas import tpu as pltpu

NEG_SLOPE = 0.01     # nn.LeakyReLU default
BN_EPS = 1e-5        # nn.BatchNorm2d default


def _leaky(v):
    return jnp.where(v >= 0, v, NEG_SLOPE * v)


def _round_up(v, m):
    return (v + m - 1) // m * m


def _pick_tile_rows(h, w, cin_pad, cout_pad, budget_bytes=20 * 1024 * 1024):
    """Largest row-tile whose dominant per-step VMEM temporaries fit the budget,
    constrained so TH*W stays a multiple of 128 (lane-aligned output blocks)."""
    k2 = cin_pad + cout_pad
    k3 = cin_pad + 2 * cout_pad
    per_row = w * (9 * (k2 + k3) * 2            # bf16 im2col columns (fused convs)
                   + (cin_pad + k2 + k3) * 4    # f32 padded-window copies
                   + 4 * cout_pad * 4           # f32 x1 / x22 / out
                   + 2 * (cin_pad + cout_pad) * 4)   # double-buffered in/out blocks
    max_rows = max(int(budget_bytes // max(per_row, 1)), 1)
    if max_rows >= h:
        return h
    step = 128 // math.gcd(w, 128)              # smallest TH with TH*W % 128 == 0
    th = (max_rows // step) * step
    if th <= 0:
        # TODO(synk): support lane-unaligned row tiles (needed when W is small/odd
        # and the image is too tall for a single tile within the VMEM budget).
        return h
    return th


def _down_block_kernel(body_ref, top_ref, bot_ref, mask_ref,
                       w1_ref, b1_ref, w2_ref, b2_ref, w3_ref, b3_ref,
                       out_ref, stat_ref, *, width, tile_rows, ones_ch):
    wd = width
    th = tile_rows

    # Assemble the (TH + 6)-row window: 3 halo rows above + TH body rows + 3 below.
    xw = jnp.concatenate(
        [top_ref[...], body_ref[...], bot_ref[...]], axis=1).astype(jnp.float32)
    ones_full = xw[ones_ch:ones_ch + 1, :]          # (1, (TH+6)*W) row-validity/bias chan

    def conv3x3(xall, w_ref, b_ref, rows_out):
        """3x3 'same' conv on a channels-major flat slab with 1 halo row each side.

        xall: (K, (rows_out+2)*W) f32.  One MXU dot on a bf16 im2col matrix; the
        horizontal out-of-row taps are zeroed with the precomputed column masks.
        """
        k, win = xall.shape
        out_len = rows_out * wd
        z = jnp.zeros((k, 1), jnp.float32)
        xp = jnp.concatenate([z, xall, z], axis=1)                  # (K, win+2)
        m0 = mask_ref[0:1, :win]
        m2 = mask_ref[1:2, :win]
        slabs = (
            (xp[:, 0:win] * m0).astype(jnp.bfloat16),               # kw = 0 (col-1)
            xp[:, 1:1 + win].astype(jnp.bfloat16),                  # kw = 1 (center)
            (xp[:, 2:2 + win] * m2).astype(jnp.bfloat16),           # kw = 2 (col+1)
        )
        taps = [slabs[kw][:, kh * wd: kh * wd + out_len]
                for kh in range(3) for kw in range(3)]
        col = jnp.concatenate(taps, axis=0)                         # (9K, out_len) bf16
        acc = jnp.dot(w_ref[...], col, preferred_element_type=jnp.float32)
        return acc + b_ref[...]

    # x1 = LeakyReLU(conv1(x)) on TH+4 rows (2 halo rows each side for the next convs);
    # rows outside the image are zeroed (= the next conv's zero padding).
    x1 = _leaky(conv3x3(xw, w1_ref, b1_ref, th + 4))
    x1 = x1 * ones_full[:, wd:(th + 5) * wd]

    # x22 = LeakyReLU(conv22(conv21(cat(x, x1))))  — fused into one 3x3 over
    # [x_aug | x1]; the ones channel inside x_aug carries conv21's bias exactly.
    xall2 = jnp.concatenate([xw[:, wd:(th + 5) * wd], x1], axis=0)
    x22 = _leaky(conv3x3(xall2, w2_ref, b2_ref, th + 2))
    x22 = x22 * ones_full[:, 2 * wd:(th + 4) * wd]

    # out = LeakyReLU(conv32(conv31(cat(x, x1, x22)))) — fused likewise.
    xall3 = jnp.concatenate(
        [xw[:, 2 * wd:(th + 4) * wd], x1[:, wd:(th + 3) * wd], x22], axis=0)
    out = _leaky(conv3x3(xall3, w3_ref, b3_ref, th))

    # Lane-dense (Cout_pad, TH*W) store.
    # TODO(synk): store `out` as bf16 to halve the BN-affine HBM traffic (kept f32
    # here for comfortable numerical headroom in the parity test).
    out_ref[...] = out.astype(out_ref.dtype)

    # Per-tile BatchNorm partial sums; rows beyond the real image height (ragged
    # last tile) are masked out via the ones channel.  Keeps both grid axes parallel.
    ones_out = ones_full[:, 3 * wd:(th + 3) * wd]
    om = out * ones_out
    stat_ref[...] = jnp.concatenate(
        [jnp.sum(om, axis=1, keepdims=True),
         jnp.sum(om * out, axis=1, keepdims=True)], axis=1)


def _prep_params(params, cin, cout, cin_pad, cout_pad):
    """PyTorch-layout parameters -> padded, fused, bf16 matmul weights.

    Column order per 3x3 tap: [x (cin), ones (1), zero-pad .. cin_pad)
                               | x1 (cout), pad .. cout_pad) | x22 ... ].
    The ones channel carries the 1x1 biases so the (conv3x3 ∘ conv1x1) fusion is
    exact, including the zero padding of the 1x1 output at image boundaries.
    """
    f32 = jnp.float32

    def assemble3x3(groups, k_pad):
        full = jnp.zeros((cout_pad, k_pad, 3, 3), f32)
        for off, arr in groups:
            full = full.at[:cout, off:off + arr.shape[1]].set(arr)
        return (jnp.transpose(full, (0, 2, 3, 1))
                .reshape(cout_pad, 9 * k_pad).astype(jnp.bfloat16))

    def padded_bias(b):
        return jnp.zeros((cout_pad, 1), f32).at[:cout, 0].set(b.astype(f32))

    def compose(w3x3, a, bvec):
        wc = jnp.einsum("ochw,ck->okhw", w3x3, a)                 # composed 3x3 weight
        wb = jnp.einsum("ochw,c->ohw", w3x3, bvec)[:, None]       # ones-channel column
        return wc, wb

    w1 = params["w1"].astype(f32)
    a21 = params["w21"].astype(f32).reshape(cout, cin + cout)
    a31 = params["w31"].astype(f32).reshape(cout, cin + 2 * cout)
    w22 = params["w22"].astype(f32)
    w32 = params["w32"].astype(f32)

    k1 = cin_pad
    k2 = cin_pad + cout_pad
    k3 = cin_pad + 2 * cout_pad

    w1m = assemble3x3([(0, w1)], k1)

    wc2, wb2 = compose(w22, a21, params["b21"].astype(f32))
    w2m = assemble3x3([(0, wc2[:, :cin]), (cin, wb2), (cin_pad, wc2[:, cin:])], k2)

    wc3, wb3 = compose(w32, a31, params["b31"].astype(f32))
    w3m = assemble3x3([(0, wc3[:, :cin]), (cin, wb3),
                       (cin_pad, wc3[:, cin:cin + cout]),
                       (cin_pad + cout_pad, wc3[:, cin + cout:])], k3)

    return (w1m, padded_bias(params["b1"]),
            w2m, padded_bias(params["b22"]),
            w3m, padded_bias(params["b32"]))


@functools.partial(jax.jit, static_argnames=("down_size", "tile_rows"))
def densenet2d_down_block(x_nchw, params, down_size, tile_rows=None):
    """Forward pass.  x_nchw: (N, Cin, Hin, Win) f32 -> (N, Cout, H, W) f32 (NCHW)."""
    x = x_nchw.astype(jnp.float32)
    if down_size is not None:                                   # nn.AvgPool2d(down_size)
        n_, c_, hin, win_ = x.shape
        x = x.reshape(n_, c_, hin // down_size, down_size,
                      win_ // down_size, down_size).mean(axis=(3, 5))
        # TODO(synk): fold the average pool into the kernel's input DMA (read
        # down_size*TH pre-pool rows per tile) to drop this intermediate's HBM pass.
    n, cin, h, w = x.shape
    cout = params["b1"].shape[0]
    cin_pad = _round_up(cin + 1, 8)     # +1: constant "ones" channel (bias/validity)
    cout_pad = _round_up(cout, 8)

    if tile_rows is not None:
        th = max(1, min(int(tile_rows), h))
    else:
        th = _pick_tile_rows(h, w, cin_pad, cout_pad)
    if th < h and (th * w) % 128 != 0:
        th = h                          # keep output blocks lane-aligned
    nt = -(-h // th)
    hp = nt * th                        # ragged bottom rows are junk (masked in stats)

    weights = _prep_params(params, cin, cout, cin_pad, cout_pad)

    # Augmented input [x, ones, zero channels]; row-padded variants for body / halos.
    ones = jnp.ones((n, 1, h, w), jnp.float32)
    zc = jnp.zeros((n, cin_pad - cin - 1, h, w), jnp.float32)
    x_aug = jnp.concatenate([x, ones, zc], axis=1)              # (N, cin_pad, H, W)
    x_body = jnp.pad(x_aug, ((0, 0), (0, 0), (0, hp - h), (0, 0)))
    x_body = x_body.reshape(n, cin_pad, hp * w)
    xp4 = jnp.pad(x_aug, ((0, 0), (0, 0), (3, 3 + hp - h), (0, 0)))
    halo_top = jnp.stack([xp4[:, :, t * th:t * th + 3, :] for t in range(nt)], axis=1)
    halo_bot = jnp.stack([xp4[:, :, t * th + th + 3:t * th + th + 6, :]
                          for t in range(nt)], axis=1)
    halo_top = halo_top.reshape(n * nt, cin_pad, 3 * w)
    halo_bot = halo_bot.reshape(n * nt, cin_pad, 3 * w)

    # Hoisted horizontal-tap column masks (shared, prefix-sliced per conv in-kernel).
    mask_len = (th + 6) * w
    col_idx = np.arange(mask_len) % w
    mask = jnp.asarray(np.stack([(col_idx >= 1), (col_idx <= w - 2)]).astype(np.float32))

    in_specs = [
        pl.BlockSpec((None, cin_pad, th * w), lambda b, t: (b, 0, t)),            # body
        pl.BlockSpec((None, cin_pad, 3 * w), lambda b, t: (b * nt + t, 0, 0)),    # top halo
        pl.BlockSpec((None, cin_pad, 3 * w), lambda b, t: (b * nt + t, 0, 0)),    # bot halo
        pl.BlockSpec((2, mask_len), lambda b, t: (0, 0)),                         # masks
    ]
    # TODO(synk): pipeline_mode=pl.Buffered(1) on the grid-invariant weight inputs
    # would halve their double-buffer VMEM.
    in_specs += [pl.BlockSpec(wt.shape, lambda b, t: (0, 0)) for wt in weights]

    out, stats = pl.pallas_call(
        functools.partial(_down_block_kernel, width=w, tile_rows=th, ones_ch=cin),
        out_shape=(
            jax.ShapeDtypeStruct((n, cout_pad, hp * w), jnp.float32),
            jax.ShapeDtypeStruct((n * nt, cout_pad, 2), jnp.float32),
        ),
        grid=(n, nt),
        in_specs=in_specs,
        out_specs=(
            pl.BlockSpec((None, cout_pad, th * w), lambda b, t: (b, 0, t)),
            pl.BlockSpec((None, cout_pad, 2), lambda b, t: (b * nt + t, 0, 0)),
        ),
        compiler_params=pltpu.CompilerParams(
            dimension_semantics=("parallel", "parallel"),
            vmem_limit_bytes=48 * 1024 * 1024),
    )(x_body, halo_top, halo_bot, mask, *weights)

    # Training-mode BatchNorm folded into one affine; XLA fuses slice + affine into a
    # single elementwise pass over `out` (no second Pallas kernel / HBM round trip).
    # TODO(synk): BatchNorm2d running-stat buffer updates are stateful and do not
    # affect the returned value; intentionally not modeled.
    cnt = jnp.float32(n * h * w)
    sums = jnp.sum(stats, axis=0)                               # (cout_pad, 2)
    mean = sums[:cout, 0] / cnt
    var = jnp.maximum(sums[:cout, 1] / cnt - mean * mean, 0.0)
    scale = params["gamma"] * lax.rsqrt(var + BN_EPS)
    shift = params["beta"] - mean * scale
    out4 = out.reshape(n, cout_pad, hp, w)[:, :cout, :h, :]     # drop pad chans / junk rows
    return out4 * scale[None, :, None, None] + shift[None, :, None, None]


def reference(x_nchw, params, down_size):
    """Pure-JAX NCHW reference mirroring the PyTorch forward (training-mode BN)."""
    x = x_nchw.astype(jnp.float32)
    if down_size is not None:
        n, c, hin, win = x.shape
        x = x.reshape(n, c, hin // down_size, down_size,
                      win // down_size, down_size).mean(axis=(3, 5))
    dn = ("NCHW", "OIHW", "NCHW")

    def conv(v, wt, b, pad):
        return (lax.conv_general_dilated(v, wt, (1, 1), pad, dimension_numbers=dn,
                                         precision=lax.Precision.HIGHEST)
                + b[None, :, None, None])

    x1 = _leaky(conv(x, params["w1"], params["b1"], "SAME"))
    x21 = jnp.concatenate([x, x1], axis=1)
    t21 = conv(x21, params["w21"], params["b21"], "VALID")
    x22 = _leaky(conv(t21, params["w22"], params["b22"], "SAME"))
    x31 = jnp.concatenate([x21, x22], axis=1)
    t31 = conv(x31, params["w31"], params["b31"], "VALID")
    out = _leaky(conv(t31, params["w32"], params["b32"], "SAME"))
    mean = out.mean(axis=(0, 2, 3), keepdims=True)
    var = out.var(axis=(0, 2, 3), keepdims=True)                # biased, training-mode BN
    return ((out - mean) * lax.rsqrt(var + BN_EPS)
            * params["gamma"][None, :, None, None] + params["beta"][None, :, None, None])


if __name__ == "__main__":
    key = jax.random.PRNGKey(0)

    def make_params(k, cin, cout):
        ks = jax.random.split(k, 12)

        def uinit(kk, shape, fan_in):
            bound = 1.0 / float(np.sqrt(fan_in))
            return jax.random.uniform(kk, shape, jnp.float32, -bound, bound)

        return {
            "w1":  uinit(ks[0], (cout, cin, 3, 3), 9 * cin),
            "b1":  uinit(ks[1], (cout,), 9 * cin),
            "w21": uinit(ks[2], (cout, cin + cout, 1, 1), cin + cout),
            "b21": uinit(ks[3], (cout,), cin + cout),
            "w22": uinit(ks[4], (cout, cout, 3, 3), 9 * cout),
            "b22": uinit(ks[5], (cout,), 9 * cout),
            "w31": uinit(ks[6], (cout, cin + 2 * cout, 1, 1), cin + 2 * cout),
            "b31": uinit(ks[7], (cout,), cin + 2 * cout),
            "w32": uinit(ks[8], (cout, cout, 3, 3), 9 * cout),
            "b32": uinit(ks[9], (cout,), 9 * cout),
            "gamma": 1.0 + 0.1 * jax.random.normal(ks[10], (cout,), jnp.float32),
            "beta": 0.1 * jax.random.normal(ks[11], (cout,), jnp.float32),
        }

    k1, k2, k3, k4 = jax.random.split(key, 4)

    # Tolerance: MXU operands are bf16 (per TPU review) and the 1x1->3x3 fusion
    # reassociates the math, then BN normalization (divide by per-channel std)
    # amplifies absolute error; genuine layout/tap/fusion bugs are O(0.5+) here.
    rtol, atol = 2e-2, 5e-2

    # Case 1: the spec's small config — single row-tile path.
    params_a = make_params(k1, cin=4, cout=8)
    x_a = jax.random.normal(k2, (2, 4, 16, 16), jnp.float32)
    y_a = jax.block_until_ready(densenet2d_down_block(x_a, params_a, down_size=2))
    np.testing.assert_allclose(np.asarray(y_a), np.asarray(reference(x_a, params_a, 2)),
                               rtol=rtol, atol=atol)

    # Case 2: forces the multi-tile path (halo bands + ragged bottom-row masking):
    # pooled H=24, tile_rows=16 -> 2 row tiles, last tile has 8 masked junk rows.
    params_b = make_params(k3, cin=3, cout=8)
    x_b = jax.random.normal(k4, (2, 3, 48, 64), jnp.float32)
    y_b = jax.block_until_ready(
        densenet2d_down_block(x_b, params_b, down_size=2, tile_rows=16))
    np.testing.assert_allclose(np.asarray(y_b), np.asarray(reference(x_b, params_b, 2)),
                               rtol=rtol, atol=atol)

    print("KERNEL_OK")
</pallas_src>

<mosaic_0001>
module attributes {stable_mosaic.version = 11 : i64} {
  func.func @_down_block_kernel(%arg0: i32, %arg1: i32, %arg2: memref<1x8x64xf32, #tpu.memory_space<vmem>>, %arg3: memref<1x8x24xf32, #tpu.memory_space<vmem>>, %arg4: memref<1x8x24xf32, #tpu.memory_space<vmem>>, %arg5: memref<2x112xf32, #tpu.memory_space<vmem>>, %arg6: memref<8x72xbf16, #tpu.memory_space<vmem>>, %arg7: memref<8x1xf32, #tpu.memory_space<vmem>>, %arg8: memref<8x144xbf16, #tpu.memory_space<vmem>>, %arg9: memref<8x1xf32, #tpu.memory_space<vmem>>, %arg10: memref<8x216xbf16, #tpu.memory_space<vmem>>, %arg11: memref<8x1xf32, #tpu.memory_space<vmem>>, %arg12: memref<1x8x64xf32, #tpu.memory_space<vmem>>, %arg13: memref<1x8x2xf32, #tpu.memory_space<vmem>>) attributes {dimension_semantics = [#tpu.dimension_semantics<parallel>, #tpu.dimension_semantics<parallel>], iteration_bounds = array<i64: 2, 1>, scalar_prefetch = 0 : i64, scratch_operands = 0 : i64, tpu.core_type = #tpu.core_type<tc>, window_params = [{transform_indices = @transform_0, window_bounds = array<i64: 1, 8, 64>}, {transform_indices = @transform_1, window_bounds = array<i64: 1, 8, 24>}, {transform_indices = @transform_2, window_bounds = array<i64: 1, 8, 24>}, {pipeline_mode = #tpu.pipeline_mode<synchronous>, transform_indices = @transform_3, window_bounds = array<i64: 2, 112>}, {pipeline_mode = #tpu.pipeline_mode<synchronous>, transform_indices = @transform_4, window_bounds = array<i64: 8, 72>}, {pipeline_mode = #tpu.pipeline_mode<synchronous>, transform_indices = @transform_5, window_bounds = array<i64: 8, 1>}, {pipeline_mode = #tpu.pipeline_mode<synchronous>, transform_indices = @transform_6, window_bounds = array<i64: 8, 144>}, {pipeline_mode = #tpu.pipeline_mode<synchronous>, transform_indices = @transform_7, window_bounds = array<i64: 8, 1>}, {pipeline_mode = #tpu.pipeline_mode<synchronous>, transform_indices = @transform_8, window_bounds = array<i64: 8, 216>}, {pipeline_mode = #tpu.pipeline_mode<synchronous>, transform_indices = @transform_9, window_bounds = array<i64: 8, 1>}, {transform_indices = @transform_10, window_bounds = array<i64: 1, 8, 64>}, {transform_indices = @transform_11, window_bounds = array<i64: 1, 8, 2>}]} {
    %c0 = arith.constant 0 : index
    %c0_0 = arith.constant 0 : index
    %c0_1 = arith.constant 0 : index
    %0 = vector.load %arg3[%c0, %c0_0, %c0_1] : memref<1x8x24xf32, #tpu.memory_space<vmem>>, vector<1x8x24xf32>
    %1 = vector.shape_cast %0 : vector<1x8x24xf32> to vector<8x24xf32>
    %c0_2 = arith.constant 0 : index
    %c0_3 = arith.constant 0 : index
    %c0_4 = arith.constant 0 : index
    %2 = vector.load %arg2[%c0_2, %c0_3, %c0_4] : memref<1x8x64xf32, #tpu.memory_space<vmem>>, vector<1x8x64xf32>
    %3 = vector.shape_cast %2 : vector<1x8x64xf32> to vector<8x64xf32>
    %c0_5 = arith.constant 0 : index
    %c0_6 = arith.constant 0 : index
    %c0_7 = arith.constant 0 : index
    %4 = vector.load %arg4[%c0_5, %c0_6, %c0_7] : memref<1x8x24xf32, #tpu.memory_space<vmem>>, vector<1x8x24xf32>
    %5 = vector.shape_cast %4 : vector<1x8x24xf32> to vector<8x24xf32>
    %6 = tpu.concatenate %1, %3, %5 in 1 : vector<8x24xf32>, vector<8x64xf32>, vector<8x24xf32> -> vector<8x112xf32>
    %7 = vector.extract_strided_slice %6 {offsets = [4, 0], sizes = [1, 112], strides = [1, 1]} : vector<8x112xf32> to vector<1x112xf32>
    %cst = arith.constant 0.000000e+00 : f32
    %8 = vector.broadcast %cst : f32 to vector<8x1xf32>
    %9 = tpu.concatenate %8, %6, %8 in 1 : vector<8x1xf32>, vector<8x112xf32>, vector<8x1xf32> -> vector<8x114xf32>
    %c0_8 = arith.constant 0 : index
    %c0_9 = arith.constant 0 : index
    %10 = vector.load %arg5[%c0_8, %c0_9] : memref<2x112xf32, #tpu.memory_space<vmem>>, vector<1x112xf32>
    %c1 = arith.constant 1 : index
    %c0_10 = arith.constant 0 : index
    %11 = vector.load %arg5[%c1, %c0_10] : memref<2x112xf32, #tpu.memory_space<vmem>>, vector<1x112xf32>
    %12 = vector.extract_strided_slice %9 {offsets = [0, 0], sizes = [8, 112], strides = [1, 1]} : vector<8x114xf32> to vector<8x112xf32>
    %13 = vector.broadcast %10 : vector<1x112xf32> to vector<8x112xf32>
    %14 = arith.mulf %12, %13 : vector<8x112xf32>
    %15 = arith.truncf %14 : vector<8x112xf32> to vector<8x112xbf16>
    %16 = vector.extract_strided_slice %9 {offsets = [0, 1], sizes = [8, 112], strides = [1, 1]} : vector<8x114xf32> to vector<8x112xf32>
    %17 = arith.truncf %16 : vector<8x112xf32> to vector<8x112xbf16>
    %18 = vector.extract_strided_slice %9 {offsets = [0, 2], sizes = [8, 112], strides = [1, 1]} : vector<8x114xf32> to vector<8x112xf32>
    %19 = vector.broadcast %11 : vector<1x112xf32> to vector<8x112xf32>
    %20 = arith.mulf %18, %19 : vector<8x112xf32>
    %21 = arith.truncf %20 : vector<8x112xf32> to vector<8x112xbf16>
    %22 = vector.extract_strided_slice %15 {offsets = [0, 0], sizes = [8, 96], strides = [1, 1]} : vector<8x112xbf16> to vector<8x96xbf16>
    %23 = vector.extract_strided_slice %17 {offsets = [0, 0], sizes = [8, 96], strides = [1, 1]} : vector<8x112xbf16> to vector<8x96xbf16>
    %24 = vector.extract_strided_slice %21 {offsets = [0, 0], sizes = [8, 96], strides = [1, 1]} : vector<8x112xbf16> to vector<8x96xbf16>
    %25 = vector.extract_strided_slice %15 {offsets = [0, 8], sizes = [8, 96], strides = [1, 1]} : vector<8x112xbf16> to vector<8x96xbf16>
    %26 = vector.extract_strided_slice %17 {offsets = [0, 8], sizes = [8, 96], strides = [1, 1]} : vector<8x112xbf16> to vector<8x96xbf16>
    %27 = vector.extract_strided_slice %21 {offsets = [0, 8], sizes = [8, 96], strides = [1, 1]} : vector<8x112xbf16> to vector<8x96xbf16>
    %28 = vector.extract_strided_slice %15 {offsets = [0, 16], sizes = [8, 96], strides = [1, 1]} : vector<8x112xbf16> to vector<8x96xbf16>
    %29 = vector.extract_strided_slice %17 {offsets = [0, 16], sizes = [8, 96], strides = [1, 1]} : vector<8x112xbf16> to vector<8x96xbf16>
    %30 = vector.extract_strided_slice %21 {offsets = [0, 16], sizes = [8, 96], strides = [1, 1]} : vector<8x112xbf16> to vector<8x96xbf16>
    %31 = tpu.concatenate %22, %23, %24, %25, %26, %27, %28, %29, %30 in 0 : vector<8x96xbf16>, vector<8x96xbf16>, vector<8x96xbf16>, vector<8x96xbf16>, vector<8x96xbf16>, vector<8x96xbf16>, vector<8x96xbf16>, vector<8x96xbf16>, vector<8x96xbf16> -> vector<72x96xbf16>
    %c0_11 = arith.constant 0 : index
    %c0_12 = arith.constant 0 : index
    %32 = vector.load %arg6[%c0_11, %c0_12] : memref<8x72xbf16, #tpu.memory_space<vmem>>, vector<8x72xbf16>
    %cst_13 = arith.constant dense<0.000000e+00> : vector<8x96xf32>
    %33 = tpu.matmul %32, %31, %cst_13 {dimension_numbers = #tpu.dot_dimension_numbers<[1], [0], [0], [1], [0, 0, 1, 1], [], []>} : vector<8x72xbf16>, vector<72x96xbf16>, vector<8x96xf32> -> vector<8x96xf32>
    %c0_14 = arith.constant 0 : index
    %c0_15 = arith.constant 0 : index
    %34 = vector.load %arg7[%c0_14, %c0_15] : memref<8x1xf32, #tpu.memory_space<vmem>>, vector<8x1xf32>
    %35 = vector.broadcast %34 : vector<8x1xf32> to vector<8x96xf32>
    %36 = arith.addf %33, %35 : vector<8x96xf32>
    %cst_16 = arith.constant 0.000000e+00 : f32
    %37 = vector.broadcast %cst_16 : f32 to vector<8x96xf32>
    %38 = arith.cmpf oge, %36, %37 : vector<8x96xf32>
    %cst_17 = arith.constant 0.00999999977 : f32
    %39 = vector.broadcast %cst_17 : f32 to vector<8x96xf32>
    %40 = arith.mulf %39, %36 : vector<8x96xf32>
    %41 = arith.select %38, %36, %40 : vector<8x96xi1>, vector<8x96xf32>
    %42 = vector.extract_strided_slice %7 {offsets = [0, 8], sizes = [1, 96], strides = [1, 1]} : vector<1x112xf32> to vector<1x96xf32>
    %43 = vector.broadcast %42 : vector<1x96xf32> to vector<8x96xf32>
    %44 = arith.mulf %41, %43 : vector<8x96xf32>
    %45 = vector.extract_strided_slice %6 {offsets = [0, 8], sizes = [8, 96], strides = [1, 1]} : vector<8x112xf32> to vector<8x96xf32>
    %46 = tpu.concatenate %45, %44 in 0 : vector<8x96xf32>, vector<8x96xf32> -> vector<16x96xf32>
    %cst_18 = arith.constant 0.000000e+00 : f32
    %47 = vector.broadcast %cst_18 : f32 to vector<16x1xf32>
    %48 = tpu.concatenate %47, %46, %47 in 1 : vector<16x1xf32>, vector<16x96xf32>, vector<16x1xf32> -> vector<16x98xf32>
    %c0_19 = arith.constant 0 : index
    %c0_20 = arith.constant 0 : index
    %49 = vector.load %arg5[%c0_19, %c0_20] : memref<2x112xf32, #tpu.memory_space<vmem>>, vector<1x96xf32>
    %c1_21 = arith.constant 1 : index
    %c0_22 = arith.constant 0 : index
    %50 = vector.load %arg5[%c1_21, %c0_22] : memref<2x112xf32, #tpu.memory_space<vmem>>, vector<1x96xf32>
    %51 = vector.extract_strided_slice %48 {offsets = [0, 0], sizes = [16, 96], strides = [1, 1]} : vector<16x98xf32> to vector<16x96xf32>
    %52 = vector.broadcast %49 : vector<1x96xf32> to vector<16x96xf32>
    %53 = arith.mulf %51, %52 : vector<16x96xf32>
    %54 = arith.truncf %53 : vector<16x96xf32> to vector<16x96xbf16>
    %55 = vector.extract_strided_slice %48 {offsets = [0, 1], sizes = [16, 96], strides = [1, 1]} : vector<16x98xf32> to vector<16x96xf32>
    %56 = arith.truncf %55 : vector<16x96xf32> to vector<16x96xbf16>
    %57 = vector.extract_strided_slice %48 {offsets = [0, 2], sizes = [16, 96], strides = [1, 1]} : vector<16x98xf32> to vector<16x96xf32>
    %58 = vector.broadcast %50 : vector<1x96xf32> to vector<16x96xf32>
    %59 = arith.mulf %57, %58 : vector<16x96xf32>
    %60 = arith.truncf %59 : vector<16x96xf32> to vector<16x96xbf16>
    %61 = vector.extract_strided_slice %54 {offsets = [0, 0], sizes = [16, 80], strides = [1, 1]} : vector<16x96xbf16> to vector<16x80xbf16>
    %62 = vector.extract_strided_slice %56 {offsets = [0, 0], sizes = [16, 80], strides = [1, 1]} : vector<16x96xbf16> to vector<16x80xbf16>
    %63 = vector.extract_strided_slice %60 {offsets = [0, 0], sizes = [16, 80], strides = [1, 1]} : vector<16x96xbf16> to vector<16x80xbf16>
    %64 = vector.extract_strided_slice %54 {offsets = [0, 8], sizes = [16, 80], strides = [1, 1]} : vector<16x96xbf16> to vector<16x80xbf16>
    %65 = vector.extract_strided_slice %56 {offsets = [0, 8], sizes = [16, 80], strides = [1, 1]} : vector<16x96xbf16> to vector<16x80xbf16>
    %66 = vector.extract_strided_slice %60 {offsets = [0, 8], sizes = [16, 80], strides = [1, 1]} : vector<16x96xbf16> to vector<16x80xbf16>
    %67 = vector.extract_strided_slice %54 {offsets = [0, 16], sizes = [16, 80], strides = [1, 1]} : vector<16x96xbf16> to vector<16x80xbf16>
    %68 = vector.extract_strided_slice %56 {offsets = [0, 16], sizes = [16, 80], strides = [1, 1]} : vector<16x96xbf16> to vector<16x80xbf16>
    %69 = vector.extract_strided_slice %60 {offsets = [0, 16], sizes = [16, 80], strides = [1, 1]} : vector<16x96xbf16> to vector<16x80xbf16>
    %70 = tpu.concatenate %61, %62, %63, %64, %65, %66, %67, %68, %69 in 0 : vector<16x80xbf16>, vector<16x80xbf16>, vector<16x80xbf16>, vector<16x80xbf16>, vector<16x80xbf16>, vector<16x80xbf16>, vector<16x80xbf16>, vector<16x80xbf16>, vector<16x80xbf16> -> vector<144x80xbf16>
    %c0_23 = arith.constant 0 : index
    %c0_24 = arith.constant 0 : index
    %71 = vector.load %arg8[%c0_23, %c0_24] : memref<8x144xbf16, #tpu.memory_space<vmem>>, vector<8x144xbf16>
    %cst_25 = arith.constant dense<0.000000e+00> : vector<8x80xf32>
    %72 = tpu.matmul %71, %70, %cst_25 {dimension_numbers = #tpu.dot_dimension_numbers<[1], [0], [0], [1], [0, 0, 1, 1], [], []>} : vector<8x144xbf16>, vector<144x80xbf16>, vector<8x80xf32> -> vector<8x80xf32>
    %c0_26 = arith.constant 0 : index
    %c0_27 = arith.constant 0 : index
    %73 = vector.load %arg9[%c0_26, %c0_27] : memref<8x1xf32, #tpu.memory_space<vmem>>, vector<8x1xf32>
    %74 = vector.broadcast %73 : vector<8x1xf32> to vector<8x80xf32>
    %75 = arith.addf %72, %74 : vector<8x80xf32>
    %cst_28 = arith.constant 0.000000e+00 : f32
    %76 = vector.broadcast %cst_28 : f32 to vector<8x80xf32>
    %77 = arith.cmpf oge, %75, %76 : vector<8x80xf32>
    %cst_29 = arith.constant 0.00999999977 : f32
    %78 = vector.broadcast %cst_29 : f32 to vector<8x80xf32>
    %79 = arith.mulf %78, %75 : vector<8x80xf32>
    %80 = arith.select %77, %75, %79 : vector<8x80xi1>, vector<8x80xf32>
    %81 = vector.extract_strided_slice %7 {offsets = [0, 16], sizes = [1, 80], strides = [1, 1]} : vector<1x112xf32> to vector<1x80xf32>
    %82 = vector.broadcast %81 : vector<1x80xf32> to vector<8x80xf32>
    %83 = arith.mulf %80, %82 : vector<8x80xf32>
    %84 = vector.extract_strided_slice %6 {offsets = [0, 16], sizes = [8, 80], strides = [1, 1]} : vector<8x112xf32> to vector<8x80xf32>
    %85 = vector.extract_strided_slice %44 {offsets = [0, 8], sizes = [8, 80], strides = [1, 1]} : vector<8x96xf32> to vector<8x80xf32>
    %86 = tpu.concatenate %84, %85, %83 in 0 : vector<8x80xf32>, vector<8x80xf32>, vector<8x80xf32> -> vector<24x80xf32>
    %cst_30 = arith.constant 0.000000e+00 : f32
    %87 = vector.broadcast %cst_30 : f32 to vector<24x1xf32>
    %88 = tpu.concatenate %87, %86, %87 in 1 : vector<24x1xf32>, vector<24x80xf32>, vector<24x1xf32> -> vector<24x82xf32>
    %c0_31 = arith.constant 0 : index
    %c0_32 = arith.constant 0 : index
    %89 = vector.load %arg5[%c0_31, %c0_32] : memref<2x112xf32, #tpu.memory_space<vmem>>, vector<1x80xf32>
    %c1_33 = arith.constant 1 : index
    %c0_34 = arith.constant 0 : index
    %90 = vector.load %arg5[%c1_33, %c0_34] : memref<2x112xf32, #tpu.memory_space<vmem>>, vector<1x80xf32>
    %91 = vector.extract_strided_slice %88 {offsets = [0, 0], sizes = [24, 80], strides = [1, 1]} : vector<24x82xf32> to vector<24x80xf32>
    %92 = vector.broadcast %89 : vector<1x80xf32> to vector<24x80xf32>
    %93 = arith.mulf %91, %92 : vector<24x80xf32>
    %94 = arith.truncf %93 : vector<24x80xf32> to vector<24x80xbf16>
    %95 = vector.extract_strided_slice %88 {offsets = [0, 1], sizes = [24, 80], strides = [1, 1]} : vector<24x82xf32> to vector<24x80xf32>
    %96 = arith.truncf %95 : vector<24x80xf32> to vector<24x80xbf16>
    %97 = vector.extract_strided_slice %88 {offsets = [0, 2], sizes = [24, 80], strides = [1, 1]} : vector<24x82xf32> to vector<24x80xf32>
    %98 = vector.broadcast %90 : vector<1x80xf32> to vector<24x80xf32>
    %99 = arith.mulf %97, %98 : vector<24x80xf32>
    %100 = arith.truncf %99 : vector<24x80xf32> to vector<24x80xbf16>
    %101 = vector.extract_strided_slice %94 {offsets = [0, 0], sizes = [24, 64], strides = [1, 1]} : vector<24x80xbf16> to vector<24x64xbf16>
    %102 = vector.extract_strided_slice %96 {offsets = [0, 0], sizes = [24, 64], strides = [1, 1]} : vector<24x80xbf16> to vector<24x64xbf16>
    %103 = vector.extract_strided_slice %100 {offsets = [0, 0], sizes = [24, 64], strides = [1, 1]} : vector<24x80xbf16> to vector<24x64xbf16>
    %104 = vector.extract_strided_slice %94 {offsets = [0, 8], sizes = [24, 64], strides = [1, 1]} : vector<24x80xbf16> to vector<24x64xbf16>
    %105 = vector.extract_strided_slice %96 {offsets = [0, 8], sizes = [24, 64], strides = [1, 1]} : vector<24x80xbf16> to vector<24x64xbf16>
    %106 = vector.extract_strided_slice %100 {offsets = [0, 8], sizes = [24, 64], strides = [1, 1]} : vector<24x80xbf16> to vector<24x64xbf16>
    %107 = vector.extract_strided_slice %94 {offsets = [0, 16], sizes = [24, 64], strides = [1, 1]} : vector<24x80xbf16> to vector<24x64xbf16>
    %108 = vector.extract_strided_slice %96 {offsets = [0, 16], sizes = [24, 64], strides = [1, 1]} : vector<24x80xbf16> to vector<24x64xbf16>
    %109 = vector.extract_strided_slice %100 {offsets = [0, 16], sizes = [24, 64], strides = [1, 1]} : vector<24x80xbf16> to vector<24x64xbf16>
    %110 = tpu.concatenate %101, %102, %103, %104, %105, %106, %107, %108, %109 in 0 : vector<24x64xbf16>, vector<24x64xbf16>, vector<24x64xbf16>, vector<24x64xbf16>, vector<24x64xbf16>, vector<24x64xbf16>, vector<24x64xbf16>, vector<24x64xbf16>, vector<24x64xbf16> -> vector<216x64xbf16>
    %c0_35 = arith.constant 0 : index
    %c0_36 = arith.constant 0 : index
    %111 = vector.load %arg10[%c0_35, %c0_36] : memref<8x216xbf16, #tpu.memory_space<vmem>>, vector<8x216xbf16>
    %cst_37 = arith.constant dense<0.000000e+00> : vector<8x64xf32>
    %112 = tpu.matmul %111, %110, %cst_37 {dimension_numbers = #tpu.dot_dimension_numbers<[1], [0], [0], [1], [0, 0, 1, 1], [], []>} : vector<8x216xbf16>, vector<216x64xbf16>, vector<8x64xf32> -> vector<8x64xf32>
    %c0_38 = arith.constant 0 : index
    %c0_39 = arith.constant 0 : index
    %113 = vector.load %arg11[%c0_38, %c0_39] : memref<8x1xf32, #tpu.memory_space<vmem>>, vector<8x1xf32>
    %114 = vector.broadcast %113 : vector<8x1xf32> to vector<8x64xf32>
    %115 = arith.addf %112, %114 : vector<8x64xf32>
    %cst_40 = arith.constant 0.000000e+00 : f32
    %116 = vector.broadcast %cst_40 : f32 to vector<8x64xf32>
    %117 = arith.cmpf oge, %115, %116 : vector<8x64xf32>
    %cst_41 = arith.constant 0.00999999977 : f32
    %118 = vector.broadcast %cst_41 : f32 to vector<8x64xf32>
    %119 = arith.mulf %118, %115 : vector<8x64xf32>
    %120 = arith.select %117, %115, %119 : vector<8x64xi1>, vector<8x64xf32>
    %c0_42 = arith.constant 0 : index
    %c0_43 = arith.constant 0 : index
    %c0_44 = arith.constant 0 : index
    %121 = vector.load %arg12[%c0_42, %c0_43, %c0_44] : memref<1x8x64xf32, #tpu.memory_space<vmem>>, vector<1x8x64xf32>
    %122 = vector.shape_cast %121 : vector<1x8x64xf32> to vector<8x64xf32>
    %123 = vector.shape_cast %120 : vector<8x64xf32> to vector<1x8x64xf32>
    tpu.vector_store %arg12[%c0_42, %c0_43, %c0_44], %123 {strides = array<i32>} : memref<1x8x64xf32, #tpu.memory_space<vmem>>, vector<1x8x64xf32>,
    %124 = vector.extract_strided_slice %7 {offsets = [0, 24], sizes = [1, 64], strides = [1, 1]} : vector<1x112xf32> to vector<1x64xf32>
    %125 = vector.broadcast %124 : vector<1x64xf32> to vector<8x64xf32>
    %126 = arith.mulf %120, %125 : vector<8x64xf32>
    %cst_45 = arith.constant dense<0.000000e+00> : vector<8xf32>
    %127 = vector.multi_reduction <add>, %126, %cst_45 [1] : vector<8x64xf32> to vector<8xf32>
    %128 = vector.shape_cast %127 : vector<8xf32> to vector<8x1xf32>
    %129 = arith.mulf %126, %120 : vector<8x64xf32>
    %cst_46 = arith.constant dense<0.000000e+00> : vector<8xf32>
    %130 = vector.multi_reduction <add>, %129, %cst_46 [1] : vector<8x64xf32> to vector<8xf32>
    %131 = vector.shape_cast %130 : vector<8xf32> to vector<8x1xf32>
    %132 = tpu.concatenate %128, %131 in 1 : vector<8x1xf32>, vector<8x1xf32> -> vector<8x2xf32>
    %c0_47 = arith.constant 0 : index
    %c0_48 = arith.constant 0 : index
    %c0_49 = arith.constant 0 : index
    %133 = vector.load %arg13[%c0_47, %c0_48, %c0_49] : memref<1x8x2xf32, #tpu.memory_space<vmem>>, vector<1x8x2xf32>
    %134 = vector.shape_cast %133 : vector<1x8x2xf32> to vector<8x2xf32>
    %135 = vector.shape_cast %132 : vector<8x2xf32> to vector<1x8x2xf32>
    tpu.vector_store %arg13[%c0_47, %c0_48, %c0_49], %135 {strides = array<i32>} : memref<1x8x2xf32, #tpu.memory_space<vmem>>, vector<1x8x2xf32>,
    return
  }
  func.func @transform_0(%arg0: i32, %arg1: i32) -> (i32, i32, i32) {
    %c0_i32 = arith.constant 0 : i32
    %c0_i32_0 = arith.constant 0 : i32
    return %arg0, %c0_i32, %arg1 : i32, i32, i32
  }
  func.func @transform_1(%arg0: i32, %arg1: i32) -> (i32, i32, i32) {
    %c1_i32 = arith.constant 1 : i32
    %0 = arith.muli %arg0, %c1_i32 : i32
    %1 = arith.addi %0, %arg1 : i32
    %c0_i32 = arith.constant 0 : i32
    %c0_i32_0 = arith.constant 0 : i32
    %c0_i32_1 = arith.constant 0 : i32
    return %1, %c0_i32, %c0_i32_0 : i32, i32, i32
  }
  func.func @transform_2(%arg0: i32, %arg1: i32) -> (i32, i32, i32) {
    %c1_i32 = arith.constant 1 : i32
    %0 = arith.muli %arg0, %c1_i32 : i32
    %1 = arith.addi %0, %arg1 : i32
    %c0_i32 = arith.constant 0 : i32
    %c0_i32_0 = arith.constant 0 : i32
    %c0_i32_1 = arith.constant 0 : i32
    return %1, %c0_i32, %c0_i32_0 : i32, i32, i32
  }
  func.func @transform_3(%arg0: i32, %arg1: i32) -> (i32, i32) {
    %c0_i32 = arith.constant 0 : i32
    %c0_i32_0 = arith.constant 0 : i32
    %c0_i32_1 = arith.constant 0 : i32
    return %c0_i32, %c0_i32_0 : i32, i32
  }
  func.func @transform_4(%arg0: i32, %arg1: i32) -> (i32, i32) {
    %c0_i32 = arith.constant 0 : i32
    %c0_i32_0 = arith.constant 0 : i32
    %c0_i32_1 = arith.constant 0 : i32
    return %c0_i32, %c0_i32_0 : i32, i32
  }
  func.func @transform_5(%arg0: i32, %arg1: i32) -> (i32, i32) {
    %c0_i32 = arith.constant 0 : i32
    %c0_i32_0 = arith.constant 0 : i32
    %c0_i32_1 = arith.constant 0 : i32
    return %c0_i32, %c0_i32_0 : i32, i32
  }
  func.func @transform_6(%arg0: i32, %arg1: i32) -> (i32, i32) {
    %c0_i32 = arith.constant 0 : i32
    %c0_i32_0 = arith.constant 0 : i32
    %c0_i32_1 = arith.constant 0 : i32
    return %c0_i32, %c0_i32_0 : i32, i32
  }
  func.func @transform_7(%arg0: i32, %arg1: i32) -> (i32, i32) {
    %c0_i32 = arith.constant 0 : i32
    %c0_i32_0 = arith.constant 0 : i32
    %c0_i32_1 = arith.constant 0 : i32
    return %c0_i32, %c0_i32_0 : i32, i32
  }
  func.func @transform_8(%arg0: i32, %arg1: i32) -> (i32, i32) {
    %c0_i32 = arith.constant 0 : i32
    %c0_i32_0 = arith.constant 0 : i32
    %c0_i32_1 = arith.constant 0 : i32
    return %c0_i32, %c0_i32_0 : i32, i32
  }
  func.func @transform_9(%arg0: i32, %arg1: i32) -> (i32, i32) {
    %c0_i32 = arith.constant 0 : i32
    %c0_i32_0 = arith.constant 0 : i32
    %c0_i32_1 = arith.constant 0 : i32
    return %c0_i32, %c0_i32_0 : i32, i32
  }
  func.func @transform_10(%arg0: i32, %arg1: i32) -> (i32, i32, i32) {
    %c0_i32 = arith.constant 0 : i32
    %c0_i32_0 = arith.constant 0 : i32
    return %arg0, %c0_i32, %arg1 : i32, i32, i32
  }
  func.func @transform_11(%arg0: i32, %arg1: i32) -> (i32, i32, i32) {
    %c1_i32 = arith.constant 1 : i32
    %0 = arith.muli %arg0, %c1_i32 : i32
    %1 = arith.addi %0, %arg1 : i32
    %c0_i32 = arith.constant 0 : i32
    %c0_i32_0 = arith.constant 0 : i32
    %c0_i32_1 = arith.constant 0 : i32
    return %1, %c0_i32, %c0_i32_0 : i32, i32, i32
  }
}

</mosaic_0001>

<bundles_post_ra>
// kernel: densenet2d_down_block.1
= control target key start
LH: loop header
LB: loop body
LE: loop exit
PB: predicated region body
PF: predicated region fallthrough
CT: control target
= control target key end

     0   :  { %s1245_s17 = smov 0   ;;  %s1247_s18 = smov 0   ;;  %s1443_s0 = inlined_call_operand.vmem [shape: f32[2,8,64], index: 0, kind: input, shape index: {}]   ;;  %s1444_s1 = inlined_call_operand.vmem [shape: f32[2,8,24], index: 1, kind: input, shape index: {}, may-alias: {1,2}]   ;;  %s1445_s2 = inlined_call_operand.vmem [shape: f32[2,8,24], index: 2, kind: input, shape index: {}, may-alias: {1,2}]   ;;  %s1446_s3 = inlined_call_operand.vmem [shape: f32[2,112], index: 3, kind: input, shape index: {}]   ;;  %s1447_s4 = inlined_call_operand.vmem [shape: bf16[8,72], index: 4, kind: input, shape index: {}]   ;;  %s1448_s5 = inlined_call_operand.vmem [shape: f32[8,1], index: 5, kind: input, shape index: {}]   ;;  %s1449_s6 = inlined_call_operand.vmem [shape: bf16[8,144], index: 6, kind: input, shape index: {}]   ;;  %s1450_s7 = inlined_call_operand.vmem [shape: f32[8,1], index: 7, kind: input, shape index: {}]   ;;  %s1451_s8 = inlined_call_operand.vmem [shape: bf16[8,216], index: 8, kind: input, shape index: {}]   ;;  %s1452_s9 = inlined_call_operand.vmem [shape: f32[8,1], index: 9, kind: input, shape index: {}]   ;;  %s1453_s10 = inlined_call_operand.vmem [shape: f32[2,8,64], index: 10, kind: output, shape index: {0}]   ;;  %s1454_s11 = inlined_call_operand.vmem [shape: f32[2,8,2], index: 11, kind: output, shape index: {1}]  }
   0x1   :  { %s1249_s19 = smov 0  }
   0x2 LB: > { %s34_s20 = sadd.s32 1, %s1159_s18  ;;  %p1055_p0 = scmp.ge.s32.totalorder %s1163_s19, 1  ;;  %s1163_s19 = sphi %s1249_s19, %s22_s19   ;;  %s1159_s18 = sphi %s1247_s18, %s1456_s18   ;;  %s1155_s17 = sphi %s1245_s17, %s1455_s17  }
   0x3   : > { %p36_p1 = scmp.ge.s32.totalorder %s34_s20, 2  ;;  %p386_p2 = scmp.lt.s32.totalorder %s1163_s19, 3 }
   0x5   : > { %s1458_s20 = smov (%p36_p1, %s34_s20), 0  ;;  %p387_p3 = pnand %p1055_p0, %p386_p2 }
   0x6   : > { %p445_p4 = scmp.lt.s32.totalorder (!%p387_p3), %s1155_s17, 1  ;;  %s1165_s28 = smov (!%p387_p3), 24   ;;  %vm489_vm0 = vcmask (!%p387_p3), 195584   ;;  %vm491_vm1 = vcmask (!%p387_p3), 719872   ;;  %v1062_v7 = vld [vmem:[%s1446_s3 + $0x1] ss:$0 sm:$0xff] (!%p387_p3)  ;;  %v616_v22 = vlaneseq (!%p387_p3) }
   0x7   : > { %390 = sbr.rel (%p387_p3) target bundleno = 1977 (0x7b9), region = 60  ;;  %s1166_s29 = smov (!%p387_p3), 88   ;;  %v1169_v8 = vmov (!%p387_p3), 0   ;;  %v1170_v9 = vmov (!%p387_p3), 0.0   ;;  %vm497_vm2 = vcmask (!%p387_p3), 7168   ;;  %vm499_vm3 = vcmask (!%p387_p3), 924672  }
   0x8   : > { %s1167_s14 = smov (!%p387_p3), 1   ;;  %1136 = vset.pattern.permute.xlu0 (!%p387_p3), %v1169_v8  ;;  %859 = vmatprep.subr.bf16.mxu0 (!%p387_p3), %v1169_v8  ;;  %v1290_v10 = vld [vmem:[%s1446_s3] ss:$0 sm:$0xff] (!%p387_p3)  ;;  %s1172_s25 = smov (!%p387_p3), 126   ;;  %vm1174_vm4 = vmmov (!%p387_p3), 0   ;;  %v617_v24 = vshrl.u32 (!%p387_p3), %v616_v22, 7 }
   0x9   : > { %1078 = vmatprep.subr.bf16.mxu1 (!%p387_p3), %v1170_v9  ;;  %s1173_s26 = smov (!%p387_p3), 120   ;;  %1088 = vmatprep.mubr.msk.bf16.mxu1 (!%p387_p3), %vm1174_vm4, %v1170_v9  ;;  %s1178_s30 = smov (!%p387_p3), 111   ;;  %v560_v26 = vld [vmem:[%s1448_s5] sm:$0xff] (!%p387_p3)  ;;  %vm542_vm5 = vcmask (!%p387_p3), 1043456   ;;  %vm566_vm6 = vcmask (!%p387_p3), 588800   ;;  %vm636_vm8 = vcmask (!%p387_p3), 793600  }
   0xa   : > { %v618_v25 = vsub.s32 (!%p387_p3), 4, %v617_v24  ;;  %s1180_s15 = smov (!%p387_p3), 121   ;;  %v559_v41 = vld [vmem:[%s1447_s4] sm:$0xf] (!%p387_p3)  ;;  %s1181_s22 = smov (!%p387_p3), 8   ;;  %vm686_vm9 = vcmask (!%p387_p3), 130048  }
   0xb   : > { %s1182_s16 = smov (!%p387_p3), 113   ;;  %vm752_vm11 = vcmask (!%p387_p3), 662528   ;;  %s1184_s12 = smov (!%p387_p3), 104   ;;  %vm902_vm13 = vcmask (!%p387_p3), 523264   ;;  %vm916_vm14 = vcmask (!%p387_p3), 15360  }
   0xe   : > { %s1460_s17 = smov (!%p445_p4, %s1155_s17), 1 }
   0xf   : > { %s1263_s21 = sshll.u32 %s1460_s17, 3  ;;  %s1168_s17 = smov 2  }
  0x10   : > { %s451_s24 = scalar_lea.vmem %s1443_s0, %s1263_s21  ;;  %s462_s27 = scalar_lea.vmem %s1445_s2, %s1263_s21 }
  0x11   : > { %v479_v0 = vld [vmem:[%s451_s24] sm:$0xff]  ;;  %s456_s13 = scalar_lea.vmem %s1444_s1, %s1263_s21  ;;  %s1171_s24 = smov 127  }
  0x12   : > { %482 = vrot.lane.b32.xlu0 %v479_v0, %s1165_s28  ;;  %v480_v1 = vld [vmem:[%s462_s27] sm:$0xff]  ;;  %s1175_s27 = smov 119   ;;  %s1176_s28 = smov 118  }
  0x13   : > { %v478_v3 = vld [vmem:[%s456_s13] sm:$0xff] }
  0x16   : > { %486 = vrot.lane.b32.xlu0 %v480_v1, %s1166_s29  ;;  %s1177_s29 = smov 112  }
  0x84   : > { %v483_v2 = vpop.permute.xlu0 %482 }
  0x85   : > { %v490_v4 = vsel %vm489_vm0, %v478_v3, %v483_v2  ;;  %v674_v2 = vld [vmem:[%s1450_s7] sm:$0xff] }
  0x86   : > { %v673_v3 = vld [vmem:[%s1449_s6] sm:$0xff] }
  0x88   : > { %v487_v5 = vpop.permute.xlu0 %486 }
  0x89   : > { %v1278_v6 = vsel %vm491_vm1, %v490_v4, %v487_v5  ;;  %v1065_v4 = vcombine.high %v673_v3, %v673_v3 }
  0x8a   : > { %494 = vrot.lane.b32.xlu1 %v1278_v6, %s1167_s14  ;;  %s1179_s14 = smov 110   ;;  %v1310_v27 = vrot.slane %v1278_v6, %v618_v25 }
  0x8e   : > { %515 = vrot.lane.b32.xlu1 %v1062_v7, %s1168_s17  ;;  %s1183_s17 = smov 16  }
  0xfc   : > { %v495_v11 = vpop.permute.xlu1 %494 }
  0xfd   : > { %v498_v12 = vsel %vm497_vm2, 0.0, %v495_v11 }
  0xfe   : > { %v500_v13 = vsel %vm499_vm3, %v498_v12, 0.0 }
  0xff   : > { %v507_v14 = vmul.f32 %v1290_v10, %v500_v13  ;;  %v509_v15 = vpack.c.bf16 %v500_v13, %v500_v13 }
 0x100   : > { %v1294_v16 = vpop.permute.xlu1 %515 }
 0x101   : > { %v508_v17 = vpack.c.bf16 %v507_v14, %v507_v14  ;;  %v521_v18 = vrot.slane %v509_v15, 4  ;;  %v518_v19 = vmul.f32 %v1294_v16, %v500_v13 }
 0x103   : > { %522 = vrot.lane.b32.xlu0 %v521_v18, %s1171_s24  ;;  %v519_v20 = vpack.c.bf16 %v518_v19, %v518_v19  ;;  %v528_v21 = vrot.slane %v508_v17, 4 }
 0x105   : > { %525 = vrot.lane.b32.xlu1 %v519_v20, %s1172_s25  ;;  %v533_v23 = vrot.slane %v519_v20, 4 }
 0x107   : > { %529 = vrot.lane.b32.xlu0 %v528_v21, %s1173_s26 }
 0x109   : > { %531 = vrot.lane.b32.xlu1 %v509_v15, %s1175_s27  ;;  %v1064_v15 = vcombine.low %v673_v3, %v673_v3 }
 0x10b   : > { %534 = vrot.lane.b32.xlu0 %v533_v23, %s1176_s28 }
 0x10d   : > { %536 = vrot.lane.b32.xlu1 %v508_v17, %s1177_s29 }
 0x10f   : > { %538 = vrot.lane.b32.xlu0 %v521_v18, %s1178_s30 }
 0x111   : > { %540 = vrot.lane.b32.xlu1 %v519_v20, %s1179_s14 }
 0x113   : > { %563 = vperm.xlu0 %1136, %v560_v26  }
 0x115   : > { %621 = vrot.lane.b32.xlu1 %v1310_v27, %s1173_s26 }
 0x117   : > { %628 = vrot.lane.b32.xlu0 %v1278_v6, %s1180_s15 }
 0x175   : > { %v523_v28 = vpop.permute.xlu0 %522 }
 0x176   : > { %v545_v29 = vsel %vm542_vm5, %v508_v17, %v523_v28 }
 0x177   : > { %1079 = vmatpush3.bf16.msra.mxu1 %v545_v29  ;;  %v526_v30 = vpop.permute.xlu1 %525 }
 0x178   : > { %1080 = vmatprep.subr.bf16.mxu1 %v1170_v9 }
 0x179   : > { %v530_v31 = vpop.permute.xlu0 %529 }
 0x17a   : > { %v549_v32 = vsel %vm542_vm5, %v526_v30, %v530_v31 }
 0x17b   : > { %1081 = vmatpush3.bf16.msra.mxu1 %v549_v32  ;;  %v532_v33 = vpop.permute.xlu1 %531 }
 0x17c   : > { %1082 = vmatprep.subr.bf16.mxu1 %v1170_v9 }
 0x17d   : > { %v535_v34 = vpop.permute.xlu0 %534 }
 0x17e   : > { %v553_v35 = vsel %vm542_vm5, %v532_v33, %v535_v34 }
 0x17f   : > { %v537_v36 = vpop.permute.xlu1 %536  ;;  %1083 = vmatpush3.bf16.msra.mxu1 %v553_v35 }
 0x180   : > { %1084 = vmatprep.subr.bf16.mxu1 %v1170_v9 }
 0x181   : > { %v539_v37 = vpop.permute.xlu0 %538 }
 0x182   : > { %v557_v38 = vsel %vm542_vm5, %v537_v36, %v539_v37 }
 0x183   : > { %v541_v39 = vpop.permute.xlu1 %540  ;;  %1085 = vmatpush3.bf16.msra.mxu1 %v557_v38 }
 0x184   : > { %1086 = vmatprep.subr.bf16.mxu1 %v1170_v9  ;;  %v571_v40 = vsel %vm542_vm5, %v541_v39, 0 }
 0x187   : > { %1087 = vmatpush3.bf16.msra.mxu1 %v571_v40  ;;  %v622_v49 = vpop.permute.xlu1 %621 }
 0x188   : > { %690 = vmatprep.subr.bf16.mxu1 %v1169_v8 }
 0x18a   : > { %1089 = vmatmul.mubr.msk.bf16.vlgmr.msra.gmra.mrb[0].mxu1 %vm566_vm6, %v559_v41 }
 0x18b   : > { %1066 = vmatprep.mubr.msk.bf16.mxu1 %vm686_vm9, %v1065_v4 }
 0x192   : > { %v564_v42 = vpop.permute.xlu0 %563 }
 0x196   : > { %v629_v53 = vpop.permute.xlu0 %628 }
 0x197   : > { %v634_v54 = vsel %vm497_vm2, 0.0, %v629_v53 }
 0x198   : > { %v637_v55 = vsel %vm636_vm8, %v634_v54, 0.0 }
 0x199   : > { %v639_v58 = vmul.f32 %v1290_v10, %v637_v55  ;;  %v643_v60 = vmul.f32 %v637_v55, %v1294_v16 }
 0x25d   : > { %v607_v43 = vpop.f32.mrb[0].mxu1 }
 0x25e   : > { %v608_v44 = vadd.f32 %v607_v43, %v564_v42  ;;  %v1090_v45 = vpop.f32.mrb[1].mxu1 }
 0x25f   : > { %v610_v46 = vpop.f32.mrb[2].mxu1  ;;  %v841_v45 = vld [vmem:[%s1452_s9] sm:$0xff] }
 0x260   : > { %vm613_vm7 = vcmp.ge.f32.partialorder %v608_v44, 0.0  ;;  %v614_v47 = vmul.f32 0.01, %v608_v44  ;;  %v1091_v48 = vpop.f32.mrb[3].mxu1 }
 0x262   : > { %v615_v50 = vsel %vm613_vm7, %v608_v44, %v614_v47 }
 0x263   : > { %v624_v51 = vmul.f32 %v622_v49, %v615_v50 }
 0x265   : > { %626 = vrot.lane.b32.xlu1 %v624_v51, %s1181_s22 }
 0x2d7   : > { %v1329_v52 = vpop.permute.xlu1 %626 }
 0x2d8   : > { %630 = vrot.lane.b32.xlu1 %v1329_v52, %s1180_s15 }
 0x34a   : > { %v631_v56 = vpop.permute.xlu1 %630 }
 0x34b   : > { %v635_v57 = vsel %vm497_vm2, 0.0, %v631_v56 }
 0x34c   : > { %v638_v59 = vsel %vm636_vm8, %v635_v57, 0.0 }
 0x34d   : > { %v640_v61 = vmul.f32 %v1290_v10, %v638_v59  ;;  %v642_v62 = vpack.c.bf16 %v638_v59, %v637_v55  ;;  %v644_v63 = vmul.f32 %v638_v59, %v1294_v16 }
 0x34f   : > { %v641_v0 = vpack.c.bf16 %v640_v61, %v639_v58  ;;  %647 = vrot.lane.b32.xlu0 %v642_v62, %s1171_s24  ;;  %v645_v1 = vpack.c.bf16 %v644_v63, %v643_v60  ;;  %v840_v60 = vld [vmem:[%s1451_s8] sm:$0xff] }
 0x350   : > { %v1068_v61 = vcombine.high %v840_v60, %v840_v60 }
 0x351   : > { %651 = vrot.lane.b32.xlu1 %v645_v1, %s1172_s25  ;;  %691 = vmatpush1.bf16.msra.mxu1 %v641_v0 }
 0x352   : > { %692 = vmatprep.subr.bf16.mxu1 %v1169_v8  ;;  %1069 = vmatprep.mubr.msk.bf16.mxu0 %vm491_vm1, %v1068_v61 }
 0x353   : > { %655 = vrot.lane.b32.xlu0 %v641_v0, %s1173_s26 }
 0x355   : > { %658 = vrot.lane.b32.xlu1 %v642_v62, %s1175_s27 }
 0x357   : > { %661 = vrot.lane.b32.xlu0 %v645_v1, %s1176_s28 }
 0x359   : > { %664 = vrot.lane.b32.xlu1 %v641_v0, %s1177_s29 }
 0x35b   : > { %667 = vrot.lane.b32.xlu0 %v642_v62, %s1178_s30 }
 0x35d   : > { %670 = vrot.lane.b32.xlu1 %v645_v1, %s1179_s14 }
 0x35f   : > { %677 = vperm.xlu0 %1136, %v674_v2  }
 0x361   : > { %733 = vrot.lane.b32.xlu1 %v1310_v27, %s1177_s29 }
 0x365   : > { %740 = vrot.lane.b32.xlu1 %v1278_v6, %s1182_s16 }
 0x3c1   : > { %v648_v5 = vpop.permute.xlu0 %647 }
 0x3c2   : > { %693 = vmatpush1.bf16.msra.mxu1 %v648_v5 }
 0x3c3   : > { %694 = vmatprep.subr.bf16.mxu1 %v1169_v8  ;;  %v652_v7 = vpop.permute.xlu1 %651 }
 0x3c5   : > { %v656_v9 = vpop.permute.xlu0 %655 }
 0x3c6   : > { %695 = vmatpush1.bf16.msra.mxu1 %v652_v7 }
 0x3c7   : > { %696 = vmatprep.subr.bf16.mxu1 %v1169_v8  ;;  %v659_v11 = vpop.permute.xlu1 %658 }
 0x3c9   : > { %v662_v12 = vpop.permute.xlu0 %661 }
 0x3ca   : > { %697 = vmatpush1.bf16.msra.mxu1 %v656_v9 }
 0x3cb   : > { %698 = vmatprep.subr.bf16.mxu1 %v1169_v8  ;;  %v665_v6 = vpop.permute.xlu1 %664 }
 0x3cd   : > { %v668_v13 = vpop.permute.xlu0 %667 }
 0x3ce   : > { %699 = vmatpush1.bf16.msra.mxu1 %v659_v11 }
 0x3cf   : > { %700 = vmatprep.subr.bf16.mxu1 %v1169_v8  ;;  %v671_v14 = vpop.permute.xlu1 %670 }
 0x3d2   : > { %701 = vmatpush1.bf16.msra.mxu1 %v662_v12 }
 0x3d3   : > { %702 = vmatprep.subr.bf16.mxu1 %v1169_v8  ;;  %v734_v24 = vpop.permute.xlu1 %733 }
 0x3d6   : > { %703 = vmatpush1.bf16.msra.mxu1 %v665_v6 }
 0x3d7   : > { %704 = vmatprep.subr.bf16.mxu1 %v1169_v8  ;;  %v741_v28 = vpop.permute.xlu1 %740 }
 0x3d8   : > { %v749_v30 = vsel %vm497_vm2, 0.0, %v741_v28 }
 0x3d9   : > { %v753_v31 = vsel %vm752_vm11, %v749_v30, 0.0 }
 0x3da   : > { %705 = vmatpush1.bf16.msra.mxu1 %v668_v13  ;;  %v756_v35 = vmul.f32 %v1290_v10, %v753_v31  ;;  %v763_v41 = vmul.f32 %v753_v31, %v1294_v16 }
 0x3db   : > { %706 = vmatprep.subr.bf16.mxu1 %v1169_v8 }
 0x3de   : > { %707 = vmatpush1.bf16.msra.mxu1 %v671_v14  ;;  %v678_v17 = vpop.permute.xlu0 %677 }
 0x3e1   : > { %723 = vmatmul.mubr.bf16.vlgmr.msra.gmra.mrb[4].mxu1 %v1064_v15 }
 0x4b4   : > { %v724_v18 = vpop.f32.mrb[4].mxu1 }
 0x4b5   : > { %v725_v19 = vadd.f32 %v724_v18, %v678_v17  ;;  %v726_v20 = vpop.f32.mrb[5].mxu1 }
 0x4b6   : > { %v727_v21 = vpop.f32.mrb[6].mxu1 }
 0x4b7   : > { %vm730_vm10 = vcmp.ge.f32.partialorder %v725_v19, 0.0  ;;  %v731_v22 = vmul.f32 0.01, %v725_v19  ;;  %v728_v23 = vpop.f32.mrb[7].mxu1 }
 0x4b9   : > { %v732_v25 = vsel %vm730_vm10, %v725_v19, %v731_v22  ;;  %v1067_v19 = vcombine.low %v840_v60, %v840_v60 }
 0x4ba   : > { %v736_v26 = vmul.f32 %v734_v24, %v732_v25 }
 0x4bc   : > { %738 = vrot.lane.b32.xlu0 %v736_v26, %s1183_s17 }
 0x4c0   : > { %742 = vrot.lane.b32.xlu0 %v1329_v52, %s1182_s16 }
 0x52e   : > { %v739_v29 = vpop.permute.xlu0 %738 }
 0x52f   : > { %744 = vrot.lane.b32.xlu1 %v739_v29, %s1182_s16 }
 0x532   : > { %v743_v32 = vpop.permute.xlu0 %742 }
 0x533   : > { %v750_v33 = vsel %vm497_vm2, 0.0, %v743_v32 }
 0x534   : > { %v754_v34 = vsel %vm752_vm11, %v750_v33, 0.0 }
 0x535   : > { %v757_v36 = vmul.f32 %v1290_v10, %v754_v34  ;;  %v761_v37 = vpack.c.bf16 %v754_v34, %v753_v31  ;;  %v764_v38 = vmul.f32 %v754_v34, %v1294_v16 }
 0x537   : > { %v771_v39 = vrot.slane %v761_v37, 4  ;;  %v759_v40 = vpack.c.bf16 %v757_v36, %v756_v35  ;;  %v766_v42 = vpack.c.bf16 %v764_v38, %v763_v41 }
 0x539   : > { %774 = vrot.lane.b32.xlu0 %v771_v39, %s1171_s24  ;;  %860 = vmatpush1.bf16.msra.mxu0 %v759_v40  ;;  %v788_v43 = vrot.slane %v759_v40, 4  ;;  %v801_v44 = vrot.slane %v766_v42, 4 }
 0x53a   : > { %861 = vmatprep.subr.bf16.mxu0 %v1169_v8 }
 0x53d   : > { %781 = vrot.lane.b32.xlu0 %v766_v42, %s1172_s25 }
 0x541   : > { %791 = vrot.lane.b32.xlu0 %v788_v43, %s1173_s26 }
 0x545   : > { %796 = vrot.lane.b32.xlu0 %v761_v37, %s1175_s27 }
 0x549   : > { %804 = vrot.lane.b32.xlu0 %v801_v44, %s1176_s28 }
 0x54d   : > { %809 = vrot.lane.b32.xlu0 %v759_v40, %s1177_s29 }
 0x551   : > { %814 = vrot.lane.b32.xlu0 %v771_v39, %s1178_s30 }
 0x555   : > { %819 = vrot.lane.b32.xlu0 %v766_v42, %s1179_s14 }
 0x559   : > { %844 = vperm.xlu0 %1136, %v841_v45  }
 0x5a1   : > { %v745_v46 = vpop.permute.xlu1 %744 }
 0x5a2   : > { %v751_v47 = vsel %vm497_vm2, 0.0, %v745_v46 }
 0x5a3   : > { %v755_v48 = vsel %vm752_vm11, %v751_v47, 0.0 }
 0x5a4   : > { %v758_v49 = vmul.f32 %v1290_v10, %v755_v48  ;;  %v762_v50 = vpack.c.bf16 %v755_v48, %v755_v48  ;;  %v765_v52 = vmul.f32 %v755_v48, %v1294_v16 }
 0x5a6   : > { %v772_v51 = vrot.slane %v762_v50, 4  ;;  %v760_v53 = vpack.c.bf16 %v758_v49, %v758_v49  ;;  %v767_v56 = vpack.c.bf16 %v765_v52, %v765_v52 }
 0x5a8   : > { %v773_v54 = vsel %vm542_vm5, %v771_v39, %v772_v51  ;;  %v789_v58 = vrot.slane %v760_v53, 4  ;;  %v802_v16 = vrot.slane %v767_v56, 4 }
 0x5a9   : > { %776 = vrot.lane.b32.xlu1 %v773_v54, %s1171_s24 }
 0x5aa   : > { %v790_v10 = vsel %vm542_vm5, %v788_v43, %v789_v58  ;;  %v803_v59 = vsel %vm542_vm5, %v801_v44, %v802_v16 }
 0x5ab   : > { %v775_v55 = vpop.permute.xlu0 %774 }
 0x5ac   : > { %v826_v57 = vsel %vm542_vm5, %v760_v53, %v775_v55 }
 0x5ad   : > { %783 = vrot.lane.b32.xlu1 %v767_v56, %s1172_s25  ;;  %862 = vmatpush1.bf16.msra.mxu0 %v826_v57 }
 0x5ae   : > { %863 = vmatprep.subr.bf16.mxu0 %v1169_v8 }
 0x5af   : > { %v782_v63 = vpop.permute.xlu0 %781 }
 0x5b1   : > { %793 = vrot.lane.b32.xlu1 %v790_v10, %s1173_s26 }
 0x5b3   : > { %v792_v1 = vpop.permute.xlu0 %791 }
 0x5b5   : > { %798 = vrot.lane.b32.xlu1 %v762_v50, %s1175_s27 }
 0x5b7   : > { %v797_v4 = vpop.permute.xlu0 %796 }
 0x5b9   : > { %806 = vrot.lane.b32.xlu1 %v803_v59, %s1176_s28  ;;  %s470_s28 = scalar_lea.vmem %s1453_s10, %s1263_s21 }
 0x5bb   : > { %v805_v5 = vpop.permute.xlu0 %804 }
 0x5bd   : > { %811 = vrot.lane.b32.xlu1 %v760_v53, %s1177_s29 }
 0x5bf   : > { %v810_v11 = vpop.permute.xlu0 %809 }
 0x5c1   : > { %816 = vrot.lane.b32.xlu1 %v773_v54, %s1178_s30 }
 0x5c3   : > { %v815_v6 = vpop.permute.xlu0 %814 }
 0x5c5   : > { %821 = vrot.lane.b32.xlu1 %v767_v56, %s1179_s14  ;;  %s475_s14 = scalar_lea.vmem %s1454_s11, %s1263_s21 }
 0x5c7   : > { %v820_v15 = vpop.permute.xlu0 %819 }
 0x5c9   : > { %904 = vrot.lane.b32.xlu1 %v1310_v27, %s1184_s12 }
 0x5d8   : > { %v845_v20 = vpop.permute.xlu0 %844 }
 0x61b   : > { %v777_v62 = vpop.permute.xlu1 %776 }
 0x61c   : > { %864 = vmatpush1.bf16.msra.mxu0 %v777_v62 }
 0x61d   : > { %865 = vmatprep.subr.bf16.mxu0 %v1169_v8 }
 0x61f   : > { %v784_v0 = vpop.permute.xlu1 %783 }
 0x620   : > { %866 = vmatpush1.bf16.msra.mxu0 %v782_v63  ;;  %v830_v2 = vsel %vm542_vm5, %v784_v0, %v792_v1 }
 0x621   : > { %867 = vmatprep.subr.bf16.mxu0 %v1169_v8 }
 0x623   : > { %v794_v3 = vpop.permute.xlu1 %793 }
 0x624   : > { %868 = vmatpush1.bf16.msra.mxu0 %v830_v2 }
 0x625   : > { %869 = vmatprep.subr.bf16.mxu0 %v1169_v8 }
 0x627   : > { %v799_v27 = vpop.permute.xlu1 %798 }
 0x628   : > { %870 = vmatpush1.bf16.msra.mxu0 %v794_v3  ;;  %v834_v7 = vsel %vm542_vm5, %v799_v27, %v805_v5 }
 0x629   : > { %871 = vmatprep.subr.bf16.mxu0 %v1169_v8 }
 0x62b   : > { %v807_v9 = vpop.permute.xlu1 %806 }
 0x62c   : > { %872 = vmatpush1.bf16.msra.mxu0 %v797_v4 }
 0x62d   : > { %873 = vmatprep.subr.bf16.mxu0 %v1169_v8 }
 0x62f   : > { %v812_v12 = vpop.permute.xlu1 %811 }
 0x630   : > { %874 = vmatpush1.bf16.msra.mxu0 %v834_v7  ;;  %v838_v13 = vsel %vm542_vm5, %v812_v12, %v815_v6 }
 0x631   : > { %875 = vmatprep.subr.bf16.mxu0 %v1169_v8 }
 0x633   : > { %v817_v14 = vpop.permute.xlu1 %816 }
 0x634   : > { %876 = vmatpush1.bf16.msra.mxu0 %v807_v9 }
 0x635   : > { %877 = vmatprep.subr.bf16.mxu0 %v1169_v8 }
 0x637   : > { %v822_v17 = vpop.permute.xlu1 %821 }
 0x638   : > { %878 = vmatpush1.bf16.msra.mxu0 %v810_v11  ;;  %v857_v18 = vsel %vm542_vm5, %v822_v17, 0 }
 0x639   : > { %879 = vmatprep.subr.bf16.mxu0 %v1169_v8 }
 0x63c   : > { %880 = vmatpush1.bf16.msra.mxu0 %v838_v13 }
 0x63d   : > { %881 = vmatprep.subr.bf16.mxu0 %v1169_v8 }
 0x640   : > { %882 = vmatpush1.bf16.msra.mxu0 %v817_v14 }
 0x641   : > { %883 = vmatprep.subr.bf16.mxu0 %v1169_v8 }
 0x644   : > { %884 = vmatpush1.bf16.msra.mxu0 %v820_v15 }
 0x645   : > { %885 = vmatprep.subr.bf16.mxu0 %v1169_v8  ;;  %v905_v8 = vpop.permute.xlu1 %904 }
 0x648   : > { %886 = vmatpush1.bf16.msra.mxu0 %v857_v18 }
 0x64b   : > { %892 = vmatmul.mubr.bf16.vlgmr.msra.gmra.mrb[0].mxu0 %v1067_v19 }
 0x71e   : > { %v893_v21 = vpop.f32.mrb[0].mxu0 }
 0x71f   : > { %v894_v22 = vadd.f32 %v893_v21, %v845_v20  ;;  %v895_v23 = vpop.f32.mrb[1].mxu0 }
 0x720   : > { %v896_v24 = vpop.f32.mrb[2].mxu0 }
 0x721   : > { %vm899_vm12 = vcmp.ge.f32.partialorder %v894_v22, 0.0  ;;  %v900_v25 = vmul.f32 0.01, %v894_v22  ;;  %v897_v26 = vpop.f32.mrb[3].mxu0 }
 0x723   : > { %v901_v28 = vsel %vm899_vm12, %v894_v22, %v900_v25 }
 0x724   : > { %903 = vst.msk [vmem:[%s470_s28] sm:$0xff] %vm902_vm13, %v901_v28  ;;  %v907_v29 = vmul.f32 %v905_v8, %v901_v28 }
 0x726   : > { %v908_v30 = vsel %vm902_vm13, %v907_v29, 0.0  ;;  %v911_v31 = vmul.f32 %v907_v29, %v901_v28 }
 0x727   : > { %909 = vadd.xlane.f32.xlu0 %v908_v30 }
 0x728   : > { %v912_v32 = vsel %vm902_vm13, %v911_v31, 0.0 }
 0x729   : > { %913 = vadd.xlane.f32.xlu1 %v912_v32 }
 0x7b4   : > { %v910_v33 = vpop.xlane.xlu0 %909 }
 0x7b6   : > { %v914_v34 = vpop.xlane.xlu1 %913 }
 0x7b7   : > { %v915_v35 = vsel %vm497_vm2, %v910_v33, %v914_v34 }
 0x7b8   : > { %917 = vst.msk [vmem:[%s475_s14] sm:$0xff] %vm916_vm14, %v915_v35 }
 0x7b9 PF: > { %s22_s19 = sadd.s32 1, %s1163_s19   ;;  %s1455_s17 = smov %s1159_s18 }
 0x7ba   : > { %p19_p5 = scmp.ge.s32.totalorder %s22_s19, 4   ;;  %s1456_s18 = smov %s1458_s20 }
 0x7bc   :  { %21 = sbr.rel (!%p19_p5) target bundleno = 2 (0x2), region = 108 }

</bundles_post_ra>
